<compile_context>
chip_gen: v7x
topology: tpu7x:2x2x1
jax: 0.10.0
libtpu: 0.0.40
codegen_flags: <defaults>
</compile_context>

<pallas_src>
import functools

import jax
import jax.numpy as jnp
from jax.experimental import pallas as pl
from jax.experimental.pallas import tpu as pltpu


def _specaug_kernel(time_stripes_num, freq_stripes_num, freq_bins,
                    t_bgn_ref, t_wid_ref, f_bgn_ref, f_wid_ref,
                    x_ref, o_ref):
    """x_ref/o_ref: (1, C, lane_tile) VMEM tile of the (B, C, T*F) view.

    t_*/f_* refs: (B * stripes_num,) int32 scalar-prefetch arrays in SMEM.
    The keep-mask is built on a (1, lane_tile) vector and shared across C.
    """
    b = pl.program_id(0)          # batch element
    j = pl.program_id(1)          # tile along the flattened T*F axis
    _, _, lane = x_ref.shape

    # Global flattened index (= t * F + f) of every lane element in this tile.
    gidx = j * lane + jax.lax.broadcasted_iota(jnp.int32, (1, lane), 1)
    # Freq index within each time row; for power-of-two freq_bins this is a
    # bitwise AND on the VPU.
    f_idx = gidx % freq_bins

    keep = jnp.ones((1, lane), dtype=jnp.bool_)

    for s in range(time_stripes_num):            # static, tiny trip count
        bgn = t_bgn_ref[b * time_stripes_num + s]
        wid = t_wid_ref[b * time_stripes_num + s]
        # Time stripe [bgn, bgn+wid) along T == flat range [bgn*F, (bgn+wid)*F)
        lo = bgn * freq_bins
        hi = (bgn + wid) * freq_bins
        keep &= jnp.logical_not((gidx >= lo) & (gidx < hi))

    for s in range(freq_stripes_num):
        bgn = f_bgn_ref[b * freq_stripes_num + s]
        wid = f_wid_ref[b * freq_stripes_num + s]
        keep &= jnp.logical_not((f_idx >= bgn) & (f_idx < bgn + wid))

    x = x_ref[...]
    o_ref[...] = x * keep[:, None, :].astype(x.dtype)


def _sample_stripes(key, batch, time_steps, freq_bins, *,
                    time_drop_width, time_stripes_num,
                    freq_drop_width, freq_stripes_num):
    """torch.randint(low=0, high=h) semantics: values in [0, h). Flat 1-D."""
    kt_w, kt_b, kf_w, kf_b = jax.random.split(key, 4)
    t_wid = jax.random.randint(kt_w, (batch * time_stripes_num,), 0,
                               time_drop_width, dtype=jnp.int32)
    t_bgn = jax.random.randint(kt_b, (batch * time_stripes_num,), 0,
                               time_steps - t_wid, dtype=jnp.int32)
    f_wid = jax.random.randint(kf_w, (batch * freq_stripes_num,), 0,
                               freq_drop_width, dtype=jnp.int32)
    f_bgn = jax.random.randint(kf_b, (batch * freq_stripes_num,), 0,
                               freq_bins - f_wid, dtype=jnp.int32)
    return t_bgn, t_wid, f_bgn, f_wid


def _pick_lane_tile(l_total, channels, itemsize, target_bytes=2 << 20):
    """Largest multiple-of-128 divisor of l_total with a block <= target_bytes."""
    if l_total % 128 != 0:
        return l_total                    # full extent is always a legal block
    max_lanes = max(128, target_bytes // max(1, channels * itemsize))
    if l_total <= max_lanes:
        return l_total
    lt = (max_lanes // 128) * 128
    while lt >= 128:
        if l_total % lt == 0:
            return lt
        lt -= 128
    return l_total                        # fallback: full extent


def spec_augmentation(x, key, *, time_drop_width, time_stripes_num,
                      freq_drop_width, freq_stripes_num, training=True):
    """JAX/Pallas equivalent of SpecAugmentation.forward.

    x: (B, C, T, F) float array.  key replaces torch's global RNG.
    """
    if not training:
        return x

    B, C, T, F = x.shape
    # randint(0, high) needs high > 0 elementwise: high = dim - wid >= dim-(dw-1)
    assert time_drop_width <= T and freq_drop_width <= F, (
        "drop_width must not exceed the corresponding axis length")

    t_bgn, t_wid, f_bgn, f_wid = _sample_stripes(
        key, B, T, F,
        time_drop_width=time_drop_width, time_stripes_num=time_stripes_num,
        freq_drop_width=freq_drop_width, freq_stripes_num=freq_stripes_num)

    # Lane-dense view: (B, C, T, F) -> (B, C, T*F)  (contiguous => free).
    l_total = T * F
    x_flat = x.reshape(B, C, l_total)

    lane_tile = _pick_lane_tile(l_total, C, x.dtype.itemsize)
    n_lane_tiles = l_total // lane_tile

    kernel = functools.partial(_specaug_kernel, time_stripes_num,
                               freq_stripes_num, F)

    in_block = pl.BlockSpec((1, C, lane_tile),
                            lambda b, j, tb, tw, fb, fw: (b, 0, j))
    out_block = pl.BlockSpec((1, C, lane_tile),
                             lambda b, j, tb, tw, fb, fw: (b, 0, j))

    grid_spec = pltpu.PrefetchScalarGridSpec(
        num_scalar_prefetch=4,
        grid=(B, n_lane_tiles),
        in_specs=[in_block],
        out_specs=out_block,
    )

    out_flat = pl.pallas_call(
        kernel,
        out_shape=jax.ShapeDtypeStruct((B, C, l_total), x.dtype),
        grid_spec=grid_spec,
        compiler_params=pltpu.CompilerParams(
            # No axis carries an accumulator -> both parallel (v7x: 2 TCs).
            dimension_semantics=("parallel", "parallel")),
    )(t_bgn, t_wid, f_bgn, f_wid, x_flat)

    return out_flat.reshape(B, C, T, F)


def _reference(x, stripes, time_stripes_num, freq_stripes_num):
    """Pure-JAX reference using the same sampled stripe begins/widths."""
    t_bgn, t_wid, f_bgn, f_wid = stripes
    B, C, T, F = x.shape
    t_bgn = t_bgn.reshape(B, time_stripes_num)
    t_wid = t_wid.reshape(B, time_stripes_num)
    f_bgn = f_bgn.reshape(B, freq_stripes_num)
    f_wid = f_wid.reshape(B, freq_stripes_num)
    t_idx = jnp.arange(T)[None, :]
    f_idx = jnp.arange(F)[None, :]
    keep_t = jnp.ones((B, T), dtype=bool)
    for s in range(time_stripes_num):
        lo = t_bgn[:, s:s + 1]
        hi = lo + t_wid[:, s:s + 1]
        keep_t &= ~((t_idx >= lo) & (t_idx < hi))
    keep_f = jnp.ones((B, F), dtype=bool)
    for s in range(freq_stripes_num):
        lo = f_bgn[:, s:s + 1]
        hi = lo + f_wid[:, s:s + 1]
        keep_f &= ~((f_idx >= lo) & (f_idx < hi))
    keep = keep_t[:, None, :, None] & keep_f[:, None, None, :]
    return x * keep.astype(x.dtype)


if __name__ == "__main__":
    # Module hyper-params (deterministic, set in-script).
    time_drop_width = 4
    time_stripes_num = 2
    freq_drop_width = 4
    freq_stripes_num = 2

    key = jax.random.PRNGKey(0)
    k_x, k_aug = jax.random.split(key)

    B, C, T, F = 2, 4, 16, 16
    x = jax.random.normal(k_x, (B, C, T, F), dtype=jnp.float32)

    y = spec_augmentation(
        x, k_aug,
        time_drop_width=time_drop_width, time_stripes_num=time_stripes_num,
        freq_drop_width=freq_drop_width, freq_stripes_num=freq_stripes_num,
        training=True)
    y = jax.block_until_ready(y)
    assert y.shape == x.shape and y.dtype == x.dtype

    # Exact check against a pure-JAX reference with the same sampled stripes.
    stripes = _sample_stripes(
        k_aug, B, T, F,
        time_drop_width=time_drop_width, time_stripes_num=time_stripes_num,
        freq_drop_width=freq_drop_width, freq_stripes_num=freq_stripes_num)
    y_ref = _reference(x, stripes, time_stripes_num, freq_stripes_num)
    assert bool(jnp.array_equal(y, y_ref))

    # Eval mode is identity.
    y_eval = spec_augmentation(
        x, k_aug,
        time_drop_width=time_drop_width, time_stripes_num=time_stripes_num,
        freq_drop_width=freq_drop_width, freq_stripes_num=freq_stripes_num,
        training=False)
    assert bool(jnp.all(y_eval == x))

    print("KERNEL_OK")
</pallas_src>

<mosaic_0001>
module attributes {stable_mosaic.version = 11 : i64} {
  func.func @_specaug_kernel(%arg0: i32, %arg1: i32, %arg2: memref<4xi32, #tpu.memory_space<smem>>, %arg3: memref<4xi32, #tpu.memory_space<smem>>, %arg4: memref<4xi32, #tpu.memory_space<smem>>, %arg5: memref<4xi32, #tpu.memory_space<smem>>, %arg6: memref<1x4x256xf32, #tpu.memory_space<vmem>>, %arg7: memref<1x4x256xf32, #tpu.memory_space<vmem>>) attributes {dimension_semantics = [#tpu.dimension_semantics<parallel>, #tpu.dimension_semantics<parallel>], iteration_bounds = array<i64: 2, 1>, scalar_prefetch = 4 : i64, scratch_operands = 0 : i64, tpu.core_type = #tpu.core_type<tc>, window_params = [{transform_indices = @transform_0, window_bounds = array<i64: 1, 4, 256>}, {transform_indices = @transform_1, window_bounds = array<i64: 1, 4, 256>}]} {
    %c256_i32 = arith.constant 256 : i32
    %0 = arith.muli %arg1, %c256_i32 : i32
    %1 = tpu.iota {dimensions = array<i32: 1>} : vector<1x256xi32>
    %2 = vector.broadcast %0 : i32 to vector<1x256xi32>
    %3 = arith.addi %2, %1 : vector<1x256xi32>
    %c16_i32 = arith.constant 16 : i32
    %c0_i32 = arith.constant 0 : i32
    %4 = arith.cmpi eq, %c16_i32, %c0_i32 : i32
    %c1_i32 = arith.constant 1 : i32
    %5 = arith.select %4, %c1_i32, %c16_i32 : i32
    %6 = vector.broadcast %5 : i32 to vector<1x256xi32>
    %7 = arith.remsi %3, %6 : vector<1x256xi32>
    %c0_i32_0 = arith.constant 0 : i32
    %8 = vector.broadcast %c0_i32_0 : i32 to vector<1x256xi32>
    %9 = arith.cmpi ne, %7, %8 : vector<1x256xi32>
    %c0_i32_1 = arith.constant 0 : i32
    %10 = vector.broadcast %c0_i32_1 : i32 to vector<1x256xi32>
    %11 = arith.cmpi slt, %7, %10 : vector<1x256xi32>
    %c0_i32_2 = arith.constant 0 : i32
    %12 = arith.cmpi slt, %5, %c0_i32_2 : i32
    %13 = vector.broadcast %12 : i1 to vector<1x256xi1>
    %14 = vector.broadcast %13 : vector<1x256xi1> to vector<1x256xi1>
    %15 = arith.xori %11, %14 : vector<1x256xi1>
    %16 = arith.andi %15, %9 : vector<1x256xi1>
    %17 = vector.broadcast %5 : i32 to vector<1x256xi32>
    %18 = arith.addi %7, %17 : vector<1x256xi32>
    %19 = arith.select %16, %18, %7 : vector<1x256xi1>, vector<1x256xi32>
    %true = arith.constant true
    %20 = vector.broadcast %true : i1 to vector<1x256xi1>
    %c2_i32 = arith.constant 2 : i32
    %21 = arith.muli %arg0, %c2_i32 : i32
    %c0_i32_3 = arith.constant 0 : i32
    %22 = arith.addi %21, %c0_i32_3 : i32
    %23 = arith.index_cast %22 : i32 to index
    %24 = memref.load %arg2[%23] : memref<4xi32, #tpu.memory_space<smem>>
    %c2_i32_4 = arith.constant 2 : i32
    %25 = arith.muli %arg0, %c2_i32_4 : i32
    %c0_i32_5 = arith.constant 0 : i32
    %26 = arith.addi %25, %c0_i32_5 : i32
    %27 = arith.index_cast %26 : i32 to index
    %28 = memref.load %arg3[%27] : memref<4xi32, #tpu.memory_space<smem>>
    %c16_i32_6 = arith.constant 16 : i32
    %29 = arith.muli %24, %c16_i32_6 : i32
    %30 = arith.addi %24, %28 : i32
    %c16_i32_7 = arith.constant 16 : i32
    %31 = arith.muli %30, %c16_i32_7 : i32
    %32 = vector.broadcast %29 : i32 to vector<1x256xi32>
    %33 = arith.cmpi sge, %3, %32 : vector<1x256xi32>
    %34 = vector.broadcast %31 : i32 to vector<1x256xi32>
    %35 = arith.cmpi slt, %3, %34 : vector<1x256xi32>
    %36 = arith.andi %33, %35 : vector<1x256xi1>
    %cst = arith.constant dense<true> : vector<1x256xi1>
    %37 = arith.xori %36, %cst : vector<1x256xi1>
    %38 = arith.andi %20, %37 : vector<1x256xi1>
    %c2_i32_8 = arith.constant 2 : i32
    %39 = arith.muli %arg0, %c2_i32_8 : i32
    %c1_i32_9 = arith.constant 1 : i32
    %40 = arith.addi %39, %c1_i32_9 : i32
    %41 = arith.index_cast %40 : i32 to index
    %42 = memref.load %arg2[%41] : memref<4xi32, #tpu.memory_space<smem>>
    %c2_i32_10 = arith.constant 2 : i32
    %43 = arith.muli %arg0, %c2_i32_10 : i32
    %c1_i32_11 = arith.constant 1 : i32
    %44 = arith.addi %43, %c1_i32_11 : i32
    %45 = arith.index_cast %44 : i32 to index
    %46 = memref.load %arg3[%45] : memref<4xi32, #tpu.memory_space<smem>>
    %c16_i32_12 = arith.constant 16 : i32
    %47 = arith.muli %42, %c16_i32_12 : i32
    %48 = arith.addi %42, %46 : i32
    %c16_i32_13 = arith.constant 16 : i32
    %49 = arith.muli %48, %c16_i32_13 : i32
    %50 = vector.broadcast %47 : i32 to vector<1x256xi32>
    %51 = arith.cmpi sge, %3, %50 : vector<1x256xi32>
    %52 = vector.broadcast %49 : i32 to vector<1x256xi32>
    %53 = arith.cmpi slt, %3, %52 : vector<1x256xi32>
    %54 = arith.andi %51, %53 : vector<1x256xi1>
    %cst_14 = arith.constant dense<true> : vector<1x256xi1>
    %55 = arith.xori %54, %cst_14 : vector<1x256xi1>
    %56 = arith.andi %38, %55 : vector<1x256xi1>
    %c2_i32_15 = arith.constant 2 : i32
    %57 = arith.muli %arg0, %c2_i32_15 : i32
    %c0_i32_16 = arith.constant 0 : i32
    %58 = arith.addi %57, %c0_i32_16 : i32
    %59 = arith.index_cast %58 : i32 to index
    %60 = memref.load %arg4[%59] : memref<4xi32, #tpu.memory_space<smem>>
    %c2_i32_17 = arith.constant 2 : i32
    %61 = arith.muli %arg0, %c2_i32_17 : i32
    %c0_i32_18 = arith.constant 0 : i32
    %62 = arith.addi %61, %c0_i32_18 : i32
    %63 = arith.index_cast %62 : i32 to index
    %64 = memref.load %arg5[%63] : memref<4xi32, #tpu.memory_space<smem>>
    %65 = vector.broadcast %60 : i32 to vector<1x256xi32>
    %66 = arith.cmpi sge, %19, %65 : vector<1x256xi32>
    %67 = arith.addi %60, %64 : i32
    %68 = vector.broadcast %67 : i32 to vector<1x256xi32>
    %69 = arith.cmpi slt, %19, %68 : vector<1x256xi32>
    %70 = arith.andi %66, %69 : vector<1x256xi1>
    %cst_19 = arith.constant dense<true> : vector<1x256xi1>
    %71 = arith.xori %70, %cst_19 : vector<1x256xi1>
    %72 = arith.andi %56, %71 : vector<1x256xi1>
    %c2_i32_20 = arith.constant 2 : i32
    %73 = arith.muli %arg0, %c2_i32_20 : i32
    %c1_i32_21 = arith.constant 1 : i32
    %74 = arith.addi %73, %c1_i32_21 : i32
    %75 = arith.index_cast %74 : i32 to index
    %76 = memref.load %arg4[%75] : memref<4xi32, #tpu.memory_space<smem>>
    %c2_i32_22 = arith.constant 2 : i32
    %77 = arith.muli %arg0, %c2_i32_22 : i32
    %c1_i32_23 = arith.constant 1 : i32
    %78 = arith.addi %77, %c1_i32_23 : i32
    %79 = arith.index_cast %78 : i32 to index
    %80 = memref.load %arg5[%79] : memref<4xi32, #tpu.memory_space<smem>>
    %81 = vector.broadcast %76 : i32 to vector<1x256xi32>
    %82 = arith.cmpi sge, %19, %81 : vector<1x256xi32>
    %83 = arith.addi %76, %80 : i32
    %84 = vector.broadcast %83 : i32 to vector<1x256xi32>
    %85 = arith.cmpi slt, %19, %84 : vector<1x256xi32>
    %86 = arith.andi %82, %85 : vector<1x256xi1>
    %cst_24 = arith.constant dense<true> : vector<1x256xi1>
    %87 = arith.xori %86, %cst_24 : vector<1x256xi1>
    %88 = arith.andi %72, %87 : vector<1x256xi1>
    %c0 = arith.constant 0 : index
    %c0_25 = arith.constant 0 : index
    %c0_26 = arith.constant 0 : index
    %89 = vector.load %arg6[%c0, %c0_25, %c0_26] : memref<1x4x256xf32, #tpu.memory_space<vmem>>, vector<1x4x256xf32>
    %90 = vector.shape_cast %88 : vector<1x256xi1> to vector<1x1x256xi1>
    %91 = arith.extui %90 : vector<1x1x256xi1> to vector<1x1x256xi32>
    %92 = arith.sitofp %91 : vector<1x1x256xi32> to vector<1x1x256xf32>
    %93 = vector.broadcast %92 : vector<1x1x256xf32> to vector<1x4x256xf32>
    %94 = arith.mulf %89, %93 : vector<1x4x256xf32>
    %c0_27 = arith.constant 0 : index
    %c0_28 = arith.constant 0 : index
    %c0_29 = arith.constant 0 : index
    %95 = vector.load %arg7[%c0_27, %c0_28, %c0_29] : memref<1x4x256xf32, #tpu.memory_space<vmem>>, vector<1x4x256xf32>
    tpu.vector_store %arg7[%c0_27, %c0_28, %c0_29], %94 {strides = array<i32>} : memref<1x4x256xf32, #tpu.memory_space<vmem>>, vector<1x4x256xf32>,
    return
  }
  func.func @transform_0(%arg0: i32, %arg1: i32, %arg2: memref<4xi32, #tpu.memory_space<smem>>, %arg3: memref<4xi32, #tpu.memory_space<smem>>, %arg4: memref<4xi32, #tpu.memory_space<smem>>, %arg5: memref<4xi32, #tpu.memory_space<smem>>) -> (i32, i32, i32) {
    %c0_i32 = arith.constant 0 : i32
    %c0_i32_0 = arith.constant 0 : i32
    return %arg0, %c0_i32, %arg1 : i32, i32, i32
  }
  func.func @transform_1(%arg0: i32, %arg1: i32, %arg2: memref<4xi32, #tpu.memory_space<smem>>, %arg3: memref<4xi32, #tpu.memory_space<smem>>, %arg4: memref<4xi32, #tpu.memory_space<smem>>, %arg5: memref<4xi32, #tpu.memory_space<smem>>) -> (i32, i32, i32) {
    %c0_i32 = arith.constant 0 : i32
    %c0_i32_0 = arith.constant 0 : i32
    return %arg0, %c0_i32, %arg1 : i32, i32, i32
  }
}

</mosaic_0001>

<bundles_post_ra>
// kernel: tpu_custom_call.1
= control target key start
LH: loop header
LB: loop body
LE: loop exit
PB: predicated region body
PF: predicated region fallthrough
CT: control target
= control target key end

     0   :  { %s919_s0 = inlined_call_operand.hbm [shape: s32[4], index: 0, kind: input, shape index: {}]   ;;  %s920_s4 = inlined_call_operand.hbm [shape: f32[2,4,256], index: 4, kind: input, shape index: {}]   ;;  %s921_s5 = inlined_call_operand.hbm [shape: f32[2,4,256], index: 5, kind: output, shape index: {}]   ;;  %s922_s1 = inlined_call_operand.vmem [shape: s32[4], index: 1, kind: input, shape index: {}]   ;;  %s923_s2 = inlined_call_operand.vmem [shape: s32[4], index: 2, kind: input, shape index: {}]   ;;  %s924_s3 = inlined_call_operand.vmem [shape: s32[4], index: 3, kind: input, shape index: {}]  }
   0x1   :  { %s472_s20 = scalar_lea.hbm %s919_s0, 16 }
   0x2   :  { %p473_p0 = scmp.ne.s32.totalorder %s919_s0, %s472_s20  ;;  %p476_p1 = scmp.lt.u32.totalorder %s472_s20, %s919_s0 }
   0x4   :  { %p478_p2 = pnand %p476_p1, %p473_p0 }
   0x6   :  { %481 = shalt.err (!%p478_p2)  }
   0x7   :  { %s634_s25 = smov [#allocation3]   ;;  %s12_s30 = sshll.u32 %s922_s1, 4  ;;  %s13_s30 = int_to_ptr.vmem [resolvable:$true] %s12_s30 }
   0x8   :  { %11 = dma.hbm_to_smem %s919_s0, 16, %s634_s25, [#allocation2] }
   0x9   :  { %s16_s8 = sshll.u32 %s923_s2, 4  ;;  %s482_s9 = scalar_lea.vmem %s13_s30, 16  ;;  %s17_s8 = int_to_ptr.vmem [resolvable:$true] %s16_s8 }
   0xa   :  { %p483_p3 = scmp.ne.s32.totalorder %s13_s30, %s482_s9  ;;  %p487_p4 = scmp.lt.s32.totalorder %s13_s30, %s13_s30 }
   0xb   :  { %p488_p5 = scmp.lt.s32.totalorder %s482_s9, %s482_s9 }
   0xd   :  { %p489_p6 = por %p488_p5, %p487_p4 }
   0xf   :  { %p490_p7 = pnand %p489_p6, %p483_p3 }
  0x11   :  { %493 = shalt.err (!%p490_p7)  }
  0x12   :  { %s635_s10 = smov [#allocation4]   ;;  %s20_s12 = sshll.u32 %s924_s3, 4  ;;  %s21_s12 = int_to_ptr.vmem [resolvable:$true] %s20_s12 }
  0x13   :  { %15 = dma.vmem_to_smem %s13_s30, 16, %s635_s10, [#allocation2] }
  0x14   :  { %s494_s1 = scalar_lea.vmem %s17_s8, 16  ;;  %p499_p9 = scmp.lt.s32.totalorder %s17_s8, %s17_s8 }
  0x15   :  { %p495_p8 = scmp.ne.s32.totalorder %s17_s8, %s494_s1  ;;  %p500_p10 = scmp.lt.s32.totalorder %s494_s1, %s494_s1 }
  0x17   :  { %p501_p11 = por %p500_p10, %p499_p9 }
  0x19   :  { %p502_p12 = pnand %p501_p11, %p495_p8 }
  0x1b   :  { %505 = shalt.err (!%p502_p12)  }
  0x1c   :  { %s636_s2 = smov [#allocation5]   ;;  %s506_s13 = scalar_lea.vmem %s21_s12, 16 }
  0x1d   :  { %19 = dma.vmem_to_smem %s17_s8, 16, %s636_s2, [#allocation2] }
  0x1e   :  { %p507_p13 = scmp.ne.s32.totalorder %s21_s12, %s506_s13  ;;  %p511_p0 = scmp.lt.s32.totalorder %s21_s12, %s21_s12 }
  0x1f   :  { %p512_p1 = scmp.lt.s32.totalorder %s506_s13, %s506_s13 }
  0x21   :  { %p513_p2 = por %p512_p1, %p511_p0 }
  0x23   :  { %p514_p3 = pnand %p513_p2, %p507_p13 }
  0x25   :  { %517 = shalt.err (!%p514_p3)  }
  0x26   :  { %s637_s14 = smov [#allocation6]  }
  0x27   :  { %23 = dma.vmem_to_smem %s21_s12, 16, %s637_s14, [#allocation2] }
  0x28   :  { %600 = dma.done.wait [#allocation2], 64 }
  0x29   :  { %601 = vsyncadd [#allocation2], 4294967232 }
  0x2a   :  { %25 = sfence }
  0x2b   :  { %26 = vsyncpa [#allocation8], 0 }
  0x2c   :  { %28 = vsyncpa [#allocation8 + $0x1], 0 }
  0x2d   :  { %29 = vsyncpa [#allocation9], 0 }
  0x2e   :  { %31 = vsyncpa [#allocation9 + $0x1], 0  ;;  %s693_s3 = smov 0   ;;  %s695_s15 = smov 0  }
  0x2f   :  { %s697_s16 = smov 0   ;;  %s699_s17 = smov 0  }
  0x30   :  { %s701_s18 = smov 0   ;;  %s703_s19 = smov 0  }
  0x31 LB: > { %s380_s20 = sadd.s32 4294967295, %s632_s19   ;;  %s381_s21 = sadd.s32 4294967294, %s632_s19   ;;  %s632_s19 = sphi %s703_s19, %s37_s19   ;;  %s628_s18 = sphi %s701_s18, %s948_s18   ;;  %s624_s17 = sphi %s699_s17, %s947_s17   ;;  %s620_s16 = sphi %s697_s16, %s946_s16   ;;  %s616_s15 = sphi %s695_s15, %s945_s15   ;;  %s612_s3 = sphi %s693_s3, %s944_s3  }
  0x32   : > { %s49_s22 = sadd.s32 1, %s628_s18  ;;  %s58_s23 = sadd.s32 1, %s620_s16 }
  0x33   : > { %p51_p4 = scmp.ge.s32.totalorder %s49_s22, 2  ;;  %p65_p5 = scmp.ne.s32.totalorder %s620_s16, %s616_s15 }
  0x34   : > { %p66_p6 = scmp.eq.s32.totalorder %s632_s19, 0  ;;  %p71_p7 = scmp.ne.s32.totalorder %s616_s15, %s612_s3 }
  0x35   : > { %s950_s22 = smov (%p51_p4, %s49_s22), 0  ;;  %p72_p9 = scmp.eq.s32.totalorder %s380_s20, 0 }
  0x36   : > { %p734_p8 = por %p66_p6, %p65_p5  ;;  %s53_s25 = ssub.s32 %s628_s18, %s950_s22 }
  0x37   : > { %p97_p10 = scmp.eq.s32.totalorder %s380_s20, 1  ;;  %p56_p11 = scmp.eq.s32.totalorder %s53_s25, 0 }
  0x38   : > { %p740_p12 = por %p72_p9, %p71_p7  ;;  %p103_p0 = scmp.eq.s32.totalorder %s381_s21, 1 }
  0x39   : > { %p744_p13 = por %p97_p10, %p65_p5  ;;  %p416_p3 = scmp.lt.s32.totalorder %s632_s19, 2 }
  0x3a   : > { %s749_s28 = scalar_select %p56_p11, %s620_s16, %s58_s23  }
  0x3b   : > { %s928_s27 = scalar_select %p744_p13, 1, 0 }
  0x3c   : > { %p751_p1 = por %p103_p0, %p71_p7  ;;  %s123_s30 = sand.u32 1, %s620_s16  }
  0x3d   : > { %s384_s6 = sshll.u32 %s123_s30, 3  ;;  %s402_s7 = sshll.u32 %s628_s18, 7 }
  0x3e   : > { %s929_s29 = scalar_select %p751_p1, 1, 0 }
  0x3f   : > { %s762_s10 = scalar_lea.hbm %s920_s4, %s402_s7  ;;  %s127_s0 = scalar_lea.vmem [#allocation7], %s384_s6 }
  0x40   : > { %s137_s11 = sshll.u32 %s127_s0, 4  ;;  %p768_p4 = pnand %p416_p3, %p734_p8  ;;  %s764_s11 = int_to_ptr.vmem [resolvable:$true] %s137_s11 }
  0x41   : > { %s124_s1 = scalar_lea.sflag [#allocation8], %s123_s30  ;;  %s518_s2 = scalar_lea.hbm %s762_s10, 128 }
  0x42   : > { %p519_p7 = scmp.ne.s32.totalorder %s762_s10, %s518_s2  ;;  %p520_p9 = pneg %p768_p4 }
  0x43   : > { %s523_s20 = scalar_lea.hbm %s920_s4, 256  ;;  %p524_p8 = scmp.lt.u32.totalorder %s762_s10, %s920_s4 }
  0x44   : > { %p521_p10 = pnand %p520_p9, %p519_p7  ;;  %p525_p0 = scmp.lt.u32.totalorder %s523_s20, %s518_s2 }
  0x45   : > { %p527_p2 = scmp.lt.u32.totalorder %s518_s2, %s762_s10 }
  0x46   : > { %p522_p11 = pneg %p521_p10  ;;  %p526_p3 = por %p525_p0, %p524_p8 }
  0x48   : > { %p528_p5 = por %p527_p2, %p526_p3 }
  0x4a   : > { %p529_p6 = pnand %p528_p5, %p522_p11 }
  0x4c   : > { %532 = shalt.err (!%p529_p6)
}
  0x4d   : > { %s533_s24 = scalar_lea.vmem %s764_s11, 128  ;;  %s638_s25 = smov [#allocation7]  }
  0x4e   : > { %p534_p7 = scmp.ne.s32.totalorder %s764_s11, %s533_s24  ;;  %s538_s30 = sshll.u32 %s638_s25, 4  ;;  %s539_s30 = int_to_ptr.vmem [resolvable:$false] %s538_s30 }
  0x4f   : > { %s540_s6 = scalar_lea.vmem %s539_s30, 256  ;;  %p541_p13 = scmp.lt.s32.totalorder %s764_s11, %s539_s30 }
  0x50   : > { %p536_p10 = pnand %p534_p7, %p520_p9  ;;  %p542_p8 = scmp.lt.s32.totalorder %s540_s6, %s533_s24 }
  0x52   : > { %p537_p1 = pneg %p536_p10  ;;  %p543_p0 = por %p542_p8, %p541_p13 }
  0x54   : > { %p544_p2 = pnand %p543_p0, %p537_p1 }
  0x56   : > { %547 = shalt.err (!%p544_p2)
}
  0x57   : > { %411 = dma.hbm_to_vmem [thread:$0]  (!%p768_p4), %s762_s10, 128, %s764_s11, %s124_s1  }
  0x58   : > { %p931_p5 = scmp.lt.s32.totalorder %s632_s19, 3  ;;  %p932_p6 = scmp.ge.s32.totalorder %s632_s19, 1 }
  0x5a   : > { %p143_p9 = pnand %p932_p6, %p931_p5 }
  0x5b   : > { %s804_s7 = sand.u32 (!%p143_p9), 1, %s616_s15  }
  0x5c   : > { %146 = sbr.rel (%p143_p9) target bundleno = 153 (0x99), region = 24  ;;  %s388_s8 = sshll.u32 (!%p143_p9), %s804_s7, 3 }
  0x5d   : > { %s149_s9 = scalar_lea.sflag (!%p143_p9), [#allocation8], %s804_s7  ;;  %s810_s0 = scalar_lea.vmem (!%p143_p9), [#allocation7], %s388_s8 }
  0x63   : > { %603 = dma.done.wait (%p740_p12), %s149_s9, 128  }
  0x64   : > { %605 = vsyncadd (%p740_p12), %s149_s9, 4294967168  ;;  %v174_v0 = vlaneseq  ;;  %s390_s10 = sshll.u32 %s624_s17, 1  ;;  %vm639_vm8 = vmmov 1   ;;  %v640_v17 = vmov 0.0   ;;  %v268_v19 = vld [vmem:[%s810_s0] sm:$0xff]  ;;  %p941_p13 = scmp.ne.s32.totalorder %s928_s27, 0 }
  0x65   : > { %s205_s11 = sld [smem:[#allocation3 + %s390_s10]]  ;;  %s220_s1 = sadd.s32 1, %s390_s10 }
  0x66   : > { %s206_s12 = sld [smem:[#allocation4 + %s390_s10]]  ;;  %v175_v1 = vand.u32 127, %v174_v0 }
  0x67   : > { %s221_s2 = sld [smem:[#allocation3 + %s220_s1]] }
  0x68   : > { %s222_s13 = sld [smem:[#allocation4 + %s220_s1]]  ;;  %v176_v2 = vadd.s32 128, %v175_v1  ;;  %v184_v8 = vand.u32 15, %v175_v1 }
  0x69   : > { %s817_s14 = sld [smem:[#allocation5 + %s390_s10]] }
  0x6a   : > { %s819_s20 = sld [smem:[#allocation6 + %s390_s10]]  ;;  %v191_v10 = vand.u32 15, %v176_v2 }
  0x6b   : > { %s391_s21 = sshll.u32 %s205_s11, 4  ;;  %s821_s26 = sld [smem:[#allocation5 + %s220_s1]] }
  0x6c   : > { %s208_s23 = sadd.s32 %s206_s12, %s205_s11  ;;  %v210_v3 = vstv %s391_s21  ;;  %s823_s9 = sld [smem:[#allocation6 + %s220_s1]] }
  0x6d   : > { %s392_s24 = sshll.u32 %s208_s23, 4  ;;  %vm211_vm0 = vcmp.ge.s32.totalorder %v175_v1, %v210_v3  ;;  %vm212_vm1 = vcmp.ge.s32.totalorder %v176_v2, %v210_v3  ;;  %s393_s25 = sshll.u32 %s221_s2, 4 }
  0x6e   : > { %v213_v4 = vstv %s392_s24  ;;  %s224_s30 = sadd.s32 %s222_s13, %s221_s2  ;;  %v226_v5 = vstv %s393_s25  ;;  %s170_s12 = scalar_lea.vmem [#allocation10], %s388_s8 }
  0x6f   : > { %vm214_vm2 = vcmp.lt.s32.totalorder %v175_v1, %v213_v4  ;;  %vm215_vm3 = vcmp.lt.s32.totalorder %v176_v2, %v213_v4  ;;  %s394_s6 = sshll.u32 %s224_s30, 4  ;;  %vm227_vm6 = vcmp.ge.s32.totalorder %v175_v1, %v226_v5  ;;  %vm228_vm10 = vcmp.ge.s32.totalorder %v176_v2, %v226_v5  ;;  %s296_s1 = sshll.u32 %s170_s12, 4  ;;  %s867_s1 = int_to_ptr.vmem [resolvable:$true] %s296_s1 }
  0x70   : > { %vm216_vm4 = vmand %vm211_vm0, %vm214_vm2  ;;  %v229_v6 = vstv %s394_s6  ;;  %s243_s10 = sadd.s32 %s819_s20, %s817_s14  ;;  %v240_v11 = vstv %s817_s14  ;;  %s403_s2 = sshll.u32 %s624_s17, 7 }
  0x71   : > { %vm217_vm5 = vmand %vm212_vm1, %vm215_vm3  ;;  %vm230_vm7 = vcmp.lt.s32.totalorder %v175_v1, %v229_v6  ;;  %vm231_vm11 = vcmp.lt.s32.totalorder %v176_v2, %v229_v6  ;;  %v244_v12 = vstv %s243_s10  ;;  %vm241_vm1 = vcmp.ge.s32.totalorder %v184_v8, %v240_v11  ;;  %s872_s20 = scalar_lea.hbm %s921_s5, %s403_s2  ;;  %s280_s21 = scalar_lea.sflag [#allocation9], %s804_s7 }
  0x72   : > { %vm828_vm9 = vmxor %vm216_vm4, %vm639_vm8  ;;  %vm245_vm2 = vcmp.lt.s32.totalorder %v184_v8, %v244_v12  ;;  %s258_s11 = sadd.s32 %s823_s9, %s821_s26  ;;  %vm242_vm4 = vcmp.ge.s32.totalorder %v191_v10, %v240_v11  ;;  %v255_v15 = vstv %s821_s26  ;;  %s548_s23 = scalar_lea.vmem %s867_s1, 128 }
  0x73   : > { %vm833_vm12 = vmxor %vm217_vm5, %vm639_vm8  ;;  %vm246_vm5 = vcmp.lt.s32.totalorder %v191_v10, %v244_v12  ;;  %v259_v16 = vstv %s258_s11  ;;  %p549_p12 = scmp.ne.s32.totalorder %s867_s1, %s548_s23  ;;  %s641_s17 = smov [#allocation10]  }
  0x74   : > { %vm232_vm13 = vmand %vm227_vm6, %vm230_vm7  ;;  %s552_s8 = sshll.u32 %s641_s17, 4  ;;  %s553_s8 = int_to_ptr.vmem [resolvable:$false] %s552_s8 }
  0x75   : > { %vm233_vm14 = vmand %vm228_vm10, %vm231_vm11  ;;  %p550_p1 = pnand %p549_p12, %p941_p13  ;;  %s554_s0 = scalar_lea.vmem %s553_s8, 256 }
  0x76   : > { %vm839_vm15 = vmxor %vm232_vm13, %vm639_vm8  ;;  %p555_p11 = scmp.lt.s32.totalorder %s867_s1, %s553_s8  ;;  %p556_p3 = scmp.lt.s32.totalorder %s554_s0, %s548_s23 }
  0x77   : > { %vm844_vm0 = vmxor %vm233_vm14, %vm639_vm8  ;;  %vm256_vm14 = vcmp.ge.s32.totalorder %v184_v8, %v255_v15  ;;  %p551_p4 = pneg %p550_p1 }
  0x78   : > { %vm236_vm3 = vmand %vm828_vm9, %vm839_vm15  ;;  %vm260_vm9 = vcmp.lt.s32.totalorder %v184_v8, %v259_v16  ;;  %p557_p7 = por %p556_p3, %p555_p11 }
  0x79   : > { %vm237_vm6 = vmand %vm833_vm12, %vm844_vm0  ;;  %vm257_vm0 = vcmp.ge.s32.totalorder %v191_v10, %v255_v15  ;;  %vm261_vm12 = vcmp.lt.s32.totalorder %v191_v10, %v259_v16 }
  0x7a   : > { %vm247_vm7 = vmand %vm241_vm1, %vm245_vm2  ;;  %p558_p10 = pnand %p557_p7, %p551_p4 }
  0x7b   : > { %vm248_vm10 = vmand %vm242_vm4, %vm246_vm5 }
  0x7c   : > { %vm249_vm11 = vmxor %vm247_vm7, %vm639_vm8 }
  0x7d   : > { %vm250_vm13 = vmxor %vm248_vm10, %vm639_vm8 }
  0x7e   : > { %vm251_vm15 = vmand %vm236_vm3, %vm249_vm11 }
  0x7f   : > { %vm252_vm1 = vmand %vm237_vm6, %vm250_vm13 }
  0x80   : > { %vm262_vm2 = vmand %vm256_vm14, %vm260_vm9 }
  0x81   : > { %vm263_vm4 = vmand %vm257_vm0, %vm261_vm12 }
  0x82   : > { %vm264_vm5 = vmxor %vm262_vm2, %vm639_vm8 }
  0x83   : > { %vm265_vm7 = vmxor %vm263_vm4, %vm639_vm8 }
  0x84   : > { %vm266_vm10 = vmand %vm251_vm15, %vm264_vm5 }
  0x85   : > { %vm267_vm3 = vmand %vm252_vm1, %vm265_vm7  ;;  %v395_v18 = vsel %vm266_vm10, 1.0, %v640_v17 }
  0x86   : > { %v396_v20 = vsel %vm267_vm3, 1.0, %v640_v17 }
  0x87   : > { %v275_v21 = vcombine.low %v395_v18, %v396_v20 }
  0x89   : > { %v277_v22 = vmul.f32 %v275_v21, %v268_v19 }
  0x8b   : > { %278 = vst [vmem:[%s170_s12] sm:$0xff] %v277_v22 }
  0x8c   : > { %561 = shalt.err (!%p558_p10)
}
  0x8d   : > { %s562_s7 = scalar_lea.hbm %s872_s20, 128  ;;  %s566_s25 = scalar_lea.hbm %s921_s5, 256 }
  0x8e   : > { %p563_p8 = scmp.ne.s32.totalorder %s872_s20, %s562_s7  ;;  %p567_p5 = scmp.lt.u32.totalorder %s872_s20, %s921_s5 }
  0x8f   : > { %p568_p6 = scmp.lt.u32.totalorder %s566_s25, %s562_s7  ;;  %p570_p12 = scmp.lt.u32.totalorder %s562_s7, %s872_s20 }
  0x90   : > { %p564_p0 = pnand %p563_p8, %p941_p13 }
  0x91   : > { %p569_p9 = por %p568_p6, %p567_p5 }
  0x92   : > { %p565_p2 = pneg %p564_p0 }
  0x93   : > { %p571_p1 = por %p570_p12, %p569_p9 }
  0x95   : > { %p572_p4 = pnand %p571_p1, %p565_p2 }
  0x97   : > { %575 = shalt.err (!%p572_p4)
}
  0x98   : > { %406 = dma.vmem_to_hbm [thread:$0]  (%p941_p13), %s867_s1, 128, %s872_s20, %s280_s21  }
  0x99 PF: > { %s308_s9 = sand.u32 1, %s612_s3   ;;  %p942_p11 = scmp.ne.s32.totalorder %s929_s29, 0 }
  0x9a   : > { %p943_p3 = scmp.ge.s32.totalorder %s632_s19, 2  ;;  %s309_s10 = scalar_lea.sflag [#allocation9], %s308_s9 }
  0x9c   : > { %p413_p7 = pnand %p943_p3, %p942_p11 }
  0x9e   : > { %607 = dma.done.wait (!%p413_p7), %s309_s10, 128  }
  0x9f   : > { %609 = vsyncadd (!%p413_p7), %s309_s10, 4294967168  ;;  %s37_s19 = sadd.s32 1, %s632_s19   ;;  %s944_s3 = smov %s616_s15 }
  0xa0   : > { %p34_p10 = scmp.ge.s32.totalorder %s37_s19, 4   ;;  %s945_s15 = smov %s620_s16 }
  0xa1   : > { %s946_s16 = smov %s749_s28  ;;  %s947_s17 = smov %s628_s18 }
  0xa2   : > { %s948_s18 = smov %s950_s22  ;;  %36 = sbr.rel (!%p34_p10) target bundleno = 49 (0x31), region = 69 }
  0xa9   :  { %314 = vsyncpa [#allocation8], 1 }
  0xaa   :  { %316 = vsyncpa [#allocation8 + $0x1], 1 }
  0xab   :  { %317 = vsyncpa [#allocation9], 1 }
  0xac   :  { %319 = vsyncpa [#allocation9 + $0x1], 1 }

</bundles_post_ra>
